<compile_context>
chip_gen: v5e
topology: v5e:2x2
jax: 0.10.0
libtpu: 0.0.40
codegen_flags: <defaults>
</compile_context>

<pallas_src>
import jax
import jax.numpy as jnp
from jax import lax
from jax.experimental import pallas as pl
from jax.experimental.pallas import tpu as pltpu


def _netvlad_kernel(x_ref, wt_ref, b_ref, c_ref, out_ref):
    # x_ref:  (Bblk, T, D)   block of batch elements
    # wt_ref: (D, K)         conv1d weight, pre-transposed in the wrapper
    # b_ref:  (1, K)         conv1d bias
    # c_ref:  (K, D)         cluster centers
    # out_ref:(Bblk, K, D)   normalized VLAD descriptors (flattened in wrapper)
    bblk, T, D = x_ref.shape
    K = c_ref.shape[0]

    x3 = x_ref[...]                                      # (Bblk, T, D)
    wt = wt_ref[...]                                     # (D, K)
    bias = b_ref[...]                                    # (1, K)
    c = c_ref[...]                                       # (K, D)

    # ---- soft assignment: one (Bblk*T, D) @ (D, K) MXU matmul + softmax(K) --
    # (Bblk, T, D) -> (Bblk*T, D) merges leading dims at a T=8 (sublane-tile)
    # boundary: pure layout relabel, no data movement.
    x2 = x3.reshape(bblk * T, D)
    logits = jnp.dot(x2, wt, preferred_element_type=jnp.float32) + bias  # (Bblk*T, K)
    m = jnp.max(logits, axis=-1, keepdims=True)
    e = jnp.exp(logits - m)
    denom = jnp.sum(e, axis=-1, keepdims=True)
    # EUP approximate reciprocal + one Newton-Raphson refine (~f32 accuracy,
    # divide stays off the VALU slots).
    r = pl.reciprocal(denom, approx=True)
    r = r * (2.0 - denom * r)
    a2 = e * r                                           # (Bblk*T, K)

    # ---- batched VLAD aggregation for the whole block -----------------------
    a3 = a2.reshape(bblk, T, K)                          # relabel (split at T=8)
    a_sum = jnp.sum(a3, axis=1)                          # (Bblk, K) batched sublane reduce
    # av[b, k, d] = sum_t a[b, t, k] * x[b, t, d]   ('btk,btd->bkd')
    av = lax.dot_general(
        a3, x3,
        dimension_numbers=(((1,), (1,)), ((0,), (0,))),
        preferred_element_type=jnp.float32)              # (Bblk, K, D)
    vlad = av - c[None, :, :] * a_sum[:, :, None]        # (Bblk, K, D)

    # ---- batched normalizations (rsqrt -> EUP) -------------------------------
    # intra-normalization (per cluster, along D)
    intra_sq = jnp.sum(vlad * vlad, axis=-1, keepdims=True)        # (Bblk, K, 1)
    vlad = vlad * lax.rsqrt(jnp.maximum(intra_sq, 1e-24))
    # global L2 normalization over the flattened (K*D) descriptor
    gsq = jnp.sum(jnp.sum(vlad * vlad, axis=-1, keepdims=True),
                  axis=-2, keepdims=True)                          # (Bblk, 1, 1)
    vlad = vlad * lax.rsqrt(jnp.maximum(gsq, 1e-24))

    # single full-block store (no per-row masked stores)
    out_ref[...] = vlad.astype(out_ref.dtype)


def netvlad_pp_forward(x, conv_w, conv_b, centers, *, bblk=None):
    """x: (B, T, D); conv_w: (K, D); conv_b: (K,); centers: (K, D) -> (B, K*D)."""
    B, T, D = x.shape
    K = centers.shape[0]

    if bblk is None:
        # Target >= 256 assignment-matmul rows per grid step, capped at B.
        bblk = max(1, min(B, max(1, 256 // T)))
    n_blocks = pl.cdiv(B, bblk)
    # v7x megacore: when splitting, keep the number of batch blocks even so
    # the "parallel" grid axis balances across the two TensorCores.
    if n_blocks > 1 and n_blocks % 2 == 1:
        bblk = pl.cdiv(B, n_blocks + 1)
        n_blocks = pl.cdiv(B, bblk)
    B_pad = n_blocks * bblk
    if B_pad != B:
        # Zero-padded batch rows are computed harmlessly (the eps clamps make
        # NaNs impossible) and sliced off below.
        x = jnp.pad(x, ((0, B_pad - B), (0, 0), (0, 0)))

    wt = conv_w.T                     # (D, K): pre-transposed, free in the wrapper
    b2d = conv_b.reshape(1, K)

    # Advisory cost estimate: two matmuls (assignment + aggregation) + exp.
    flops = 4 * B_pad * T * D * K
    transcendentals = B_pad * T * K
    bytes_accessed = 4 * (B_pad * T * D + B_pad * K * D + 2 * K * D + K)

    out = pl.pallas_call(
        _netvlad_kernel,
        out_shape=jax.ShapeDtypeStruct((B_pad, K, D), jnp.float32),
        grid_spec=pltpu.PrefetchScalarGridSpec(
            num_scalar_prefetch=0,
            grid=(n_blocks,),
            in_specs=[
                pl.BlockSpec((bblk, T, D), lambda i: (i, 0, 0)),  # x block
                pl.BlockSpec((D, K), lambda i: (0, 0)),           # weight (VMEM-resident)
                pl.BlockSpec((1, K), lambda i: (0, 0)),           # bias
                pl.BlockSpec((K, D), lambda i: (0, 0)),           # centers
            ],
            out_specs=pl.BlockSpec((bblk, K, D), lambda i: (i, 0, 0)),
        ),
        compiler_params=pltpu.CompilerParams(
            dimension_semantics=("parallel",)),   # shards batch blocks across TCs (v7x)
        cost_estimate=pl.CostEstimate(
            flops=flops,
            transcendentals=transcendentals,
            bytes_accessed=bytes_accessed),
    )(x, wt, b2d, centers)

    # flatten (B, K, D) -> (B, K*D): pure glue, normalization already in-kernel
    return out[:B].reshape(B, K * D)


def netvlad_pp_reference(x, conv_w, conv_b, centers):
    """Pure-JAX reference mirroring the PyTorch module exactly."""
    B, T, D = x.shape
    K = centers.shape[0]
    logits = jnp.einsum("btd,kd->bkt", x, conv_w,
                        precision=lax.Precision.HIGHEST) + conv_b[None, :, None]
    a = jax.nn.softmax(logits, axis=1)                                       # (B,K,T)
    residuals = x[:, None, :, :] - centers[None, :, None, :]                 # (B,K,T,D)
    vlad = jnp.sum(residuals * a[..., None], axis=2)                         # (B,K,D)
    vlad = vlad / jnp.maximum(
        jnp.linalg.norm(vlad, axis=-1, keepdims=True), 1e-12)
    vlad = vlad.reshape(B, K * D)
    vlad = vlad / jnp.maximum(
        jnp.linalg.norm(vlad, axis=-1, keepdims=True), 1e-12)
    return vlad


if __name__ == "__main__":
    # small shapes consistent with the module: batch=2, clip_len T=8, feature_dim D=32
    B, T, D, K = 2, 8, 32, 16

    key = jax.random.PRNGKey(0)
    kx, kc, kw, kb = jax.random.split(key, 4)

    x = jax.random.normal(kx, (B, T, D), dtype=jnp.float32)
    # deterministic parameter init (shapes per the module's __init__)
    centers = jax.random.uniform(kc, (K, D), dtype=jnp.float32)             # torch.rand
    conv_w = jax.random.uniform(kw, (K, D), dtype=jnp.float32,
                                minval=-0.1, maxval=0.1)                     # Conv1d weight (K,D,1) squeezed
    conv_b = jax.random.uniform(kb, (K,), dtype=jnp.float32,
                                minval=-0.1, maxval=0.1)                     # Conv1d bias

    out = netvlad_pp_forward(x, conv_w, conv_b, centers)
    out = jax.block_until_ready(out)

    ref = netvlad_pp_reference(x, conv_w, conv_b, centers)
    assert out.shape == (B, K * D)
    assert jnp.allclose(out, ref, atol=1e-4, rtol=1e-4), "mismatch vs reference"

    print("KERNEL_OK")
</pallas_src>

<mosaic_0001>
module attributes {stable_mosaic.version = 11 : i64} {
  func.func @_netvlad_kernel(%arg0: i32, %arg1: memref<2x8x32xf32, #tpu.memory_space<vmem>>, %arg2: memref<32x16xf32, #tpu.memory_space<vmem>>, %arg3: memref<1x16xf32, #tpu.memory_space<vmem>>, %arg4: memref<16x32xf32, #tpu.memory_space<vmem>>, %arg5: memref<2x16x32xf32, #tpu.memory_space<vmem>>) attributes {dimension_semantics = [#tpu.dimension_semantics<parallel>], iteration_bounds = array<i64: 1>, scalar_prefetch = 0 : i64, scratch_operands = 0 : i64, tpu.core_type = #tpu.core_type<tc>, window_params = [{transform_indices = @transform_0, window_bounds = array<i64: 2, 8, 32>}, {pipeline_mode = #tpu.pipeline_mode<synchronous>, transform_indices = @transform_1, window_bounds = array<i64: 32, 16>}, {pipeline_mode = #tpu.pipeline_mode<synchronous>, transform_indices = @transform_2, window_bounds = array<i64: 1, 16>}, {pipeline_mode = #tpu.pipeline_mode<synchronous>, transform_indices = @transform_3, window_bounds = array<i64: 16, 32>}, {transform_indices = @transform_4, window_bounds = array<i64: 2, 16, 32>}]} {
    %c0 = arith.constant 0 : index
    %c0_0 = arith.constant 0 : index
    %c0_1 = arith.constant 0 : index
    %0 = vector.load %arg1[%c0, %c0_0, %c0_1] : memref<2x8x32xf32, #tpu.memory_space<vmem>>, vector<2x8x32xf32>
    %c0_2 = arith.constant 0 : index
    %c0_3 = arith.constant 0 : index
    %1 = vector.load %arg2[%c0_2, %c0_3] : memref<32x16xf32, #tpu.memory_space<vmem>>, vector<32x16xf32>
    %c0_4 = arith.constant 0 : index
    %c0_5 = arith.constant 0 : index
    %2 = vector.load %arg3[%c0_4, %c0_5] : memref<1x16xf32, #tpu.memory_space<vmem>>, vector<1x16xf32>
    %c0_6 = arith.constant 0 : index
    %c0_7 = arith.constant 0 : index
    %3 = vector.load %arg4[%c0_6, %c0_7] : memref<16x32xf32, #tpu.memory_space<vmem>>, vector<16x32xf32>
    %4 = vector.shape_cast %0 : vector<2x8x32xf32> to vector<16x32xf32>
    %cst = arith.constant dense<0.000000e+00> : vector<16x16xf32>
    %5 = tpu.matmul %4, %1, %cst {dimension_numbers = #tpu.dot_dimension_numbers<[1], [0], [0], [1], [0, 0, 1, 1], [], []>} : vector<16x32xf32>, vector<32x16xf32>, vector<16x16xf32> -> vector<16x16xf32>
    %6 = vector.broadcast %2 : vector<1x16xf32> to vector<16x16xf32>
    %7 = arith.addf %5, %6 : vector<16x16xf32>
    %cst_8 = arith.constant dense<0xFF800000> : vector<16xf32>
    %8 = vector.multi_reduction <maximumf>, %7, %cst_8 [1] : vector<16x16xf32> to vector<16xf32>
    %9 = vector.shape_cast %8 : vector<16xf32> to vector<16x1xf32>
    %10 = vector.broadcast %9 : vector<16x1xf32> to vector<16x16xf32>
    %11 = arith.subf %7, %10 : vector<16x16xf32>
    %12 = math.exp %11 : vector<16x16xf32>
    %cst_9 = arith.constant dense<0.000000e+00> : vector<16xf32>
    %13 = vector.multi_reduction <add>, %12, %cst_9 [1] : vector<16x16xf32> to vector<16xf32>
    %14 = vector.shape_cast %13 : vector<16xf32> to vector<16x1xf32>
    %15 = tpu.reciprocal %14 {approx = true} : vector<16x1xf32> -> vector<16x1xf32>
    %16 = arith.mulf %14, %15 : vector<16x1xf32>
    %cst_10 = arith.constant 2.000000e+00 : f32
    %17 = vector.broadcast %cst_10 : f32 to vector<16x1xf32>
    %18 = arith.subf %17, %16 : vector<16x1xf32>
    %19 = arith.mulf %15, %18 : vector<16x1xf32>
    %20 = vector.broadcast %19 : vector<16x1xf32> to vector<16x16xf32>
    %21 = arith.mulf %12, %20 : vector<16x16xf32>
    %22 = vector.shape_cast %21 : vector<16x16xf32> to vector<2x8x16xf32>
    %cst_11 = arith.constant dense<0.000000e+00> : vector<2x16xf32>
    %23 = vector.multi_reduction <add>, %22, %cst_11 [1] : vector<2x8x16xf32> to vector<2x16xf32>
    %cst_12 = arith.constant dense<0.000000e+00> : vector<2x16x32xf32>
    %24 = tpu.matmul %22, %0, %cst_12 {dimension_numbers = #tpu.dot_dimension_numbers<[1], [1], [2], [2], [0, 0, 0, 2, 1, 2], [0], [0]>} : vector<2x8x16xf32>, vector<2x8x32xf32>, vector<2x16x32xf32> -> vector<2x16x32xf32>
    %25 = vector.shape_cast %3 : vector<16x32xf32> to vector<1x16x32xf32>
    %26 = vector.shape_cast %23 : vector<2x16xf32> to vector<2x16x1xf32>
    %27 = vector.broadcast %25 : vector<1x16x32xf32> to vector<2x16x32xf32>
    %28 = vector.broadcast %26 : vector<2x16x1xf32> to vector<2x16x32xf32>
    %29 = arith.mulf %27, %28 : vector<2x16x32xf32>
    %30 = arith.subf %24, %29 : vector<2x16x32xf32>
    %31 = arith.mulf %30, %30 : vector<2x16x32xf32>
    %cst_13 = arith.constant dense<0.000000e+00> : vector<2x16xf32>
    %32 = vector.multi_reduction <add>, %31, %cst_13 [2] : vector<2x16x32xf32> to vector<2x16xf32>
    %33 = vector.shape_cast %32 : vector<2x16xf32> to vector<2x16x1xf32>
    %cst_14 = arith.constant 1.000000e-24 : f32
    %34 = vector.broadcast %cst_14 : f32 to vector<2x16x1xf32>
    %35 = arith.maximumf %33, %34 : vector<2x16x1xf32>
    %36 = math.rsqrt %35 : vector<2x16x1xf32>
    %37 = vector.broadcast %36 : vector<2x16x1xf32> to vector<2x16x32xf32>
    %38 = arith.mulf %30, %37 : vector<2x16x32xf32>
    %39 = arith.mulf %38, %38 : vector<2x16x32xf32>
    %cst_15 = arith.constant dense<0.000000e+00> : vector<2x16xf32>
    %40 = vector.multi_reduction <add>, %39, %cst_15 [2] : vector<2x16x32xf32> to vector<2x16xf32>
    %41 = vector.shape_cast %40 : vector<2x16xf32> to vector<2x16x1xf32>
    %cst_16 = arith.constant dense<0.000000e+00> : vector<2x1xf32>
    %42 = vector.multi_reduction <add>, %41, %cst_16 [1] : vector<2x16x1xf32> to vector<2x1xf32>
    %43 = vector.shape_cast %42 : vector<2x1xf32> to vector<2x1x1xf32>
    %cst_17 = arith.constant 1.000000e-24 : f32
    %44 = vector.broadcast %cst_17 : f32 to vector<2x1x1xf32>
    %45 = arith.maximumf %43, %44 : vector<2x1x1xf32>
    %46 = math.rsqrt %45 : vector<2x1x1xf32>
    %47 = vector.broadcast %46 : vector<2x1x1xf32> to vector<2x16x32xf32>
    %48 = arith.mulf %38, %47 : vector<2x16x32xf32>
    %c0_18 = arith.constant 0 : index
    %c0_19 = arith.constant 0 : index
    %c0_20 = arith.constant 0 : index
    %49 = vector.load %arg5[%c0_18, %c0_19, %c0_20] : memref<2x16x32xf32, #tpu.memory_space<vmem>>, vector<2x16x32xf32>
    tpu.vector_store %arg5[%c0_18, %c0_19, %c0_20], %48 {strides = array<i32>} : memref<2x16x32xf32, #tpu.memory_space<vmem>>, vector<2x16x32xf32>,
    return
  }
  func.func @transform_0(%arg0: i32) -> (i32, i32, i32) {
    %c0_i32 = arith.constant 0 : i32
    %c0_i32_0 = arith.constant 0 : i32
    %c0_i32_1 = arith.constant 0 : i32
    return %arg0, %c0_i32, %c0_i32_0 : i32, i32, i32
  }
  func.func @transform_1(%arg0: i32) -> (i32, i32) {
    %c0_i32 = arith.constant 0 : i32
    %c0_i32_0 = arith.constant 0 : i32
    %c0_i32_1 = arith.constant 0 : i32
    return %c0_i32, %c0_i32_0 : i32, i32
  }
  func.func @transform_2(%arg0: i32) -> (i32, i32) {
    %c0_i32 = arith.constant 0 : i32
    %c0_i32_0 = arith.constant 0 : i32
    %c0_i32_1 = arith.constant 0 : i32
    return %c0_i32, %c0_i32_0 : i32, i32
  }
  func.func @transform_3(%arg0: i32) -> (i32, i32) {
    %c0_i32 = arith.constant 0 : i32
    %c0_i32_0 = arith.constant 0 : i32
    %c0_i32_1 = arith.constant 0 : i32
    return %c0_i32, %c0_i32_0 : i32, i32
  }
  func.func @transform_4(%arg0: i32) -> (i32, i32, i32) {
    %c0_i32 = arith.constant 0 : i32
    %c0_i32_0 = arith.constant 0 : i32
    %c0_i32_1 = arith.constant 0 : i32
    return %arg0, %c0_i32, %c0_i32_0 : i32, i32, i32
  }
}

</mosaic_0001>

<bundles_post_ra>
// kernel: tpu_custom_call.1
= control target key start
LH: loop header
LB: loop body
LE: loop exit
PB: predicated region body
PF: predicated region fallthrough
CT: control target
= control target key end

     0   :  { %s568_s0 = inlined_call_operand.vmem [shape: f32[2,8,32], index: 0, kind: input, shape index: {}]   ;;  %s569_s1 = inlined_call_operand.vmem [shape: f32[32,16], index: 1, kind: input, shape index: {}]   ;;  %s570_s2 = inlined_call_operand.vmem [shape: f32[1,16], index: 2, kind: input, shape index: {}]   ;;  %s571_s3 = inlined_call_operand.vmem [shape: f32[16,32], index: 3, kind: input, shape index: {}]   ;;  %s572_s4 = inlined_call_operand.hbm [shape: f32[2,16,32], index: 4, kind: output, shape index: {}]  }
   0x1   :  { %v23_v0 = vld [vmem:[%s569_s1 + $0x18] sm:$0xff]  ;;  %v22_v1 = vld [vmem:[%s569_s1 + $0x10] sm:$0xff]  ;;  %v19_v2 = vld [vmem:[%s568_s0 + $0x8] sm:$0xff] }
   0x2   :  { %406 = vmatpush.msra.mxu3 %v23_v0  ;;  %49 = vmatpush.msra.mxu0 %v23_v0  ;;  %v18_v3 = vld [vmem:[%s568_s0] sm:$0xff]  ;;  %v21_v4 = vld [vmem:[%s569_s1 + $0x8] sm:$0xff] }
   0x3   :  { %218 = vmatpush.msra.mxu2 %v19_v2  ;;  %157 = vmatpush.msra.mxu1 %v18_v3 }
   0x4   :  { %9 = vsyncpa [#allocation3], 0  ;;  %407 = vmatpush.msra.mxu3 %v22_v1  ;;  %50 = vmatpush.msra.mxu0 %v22_v1  ;;  %v20_v5 = vld [vmem:[%s569_s1] sm:$0xff]  ;;  %vm30_vm0 = vcmask 261120   ;;  %vm60_vm1 = vcmask 130048   ;;  %v226_v23 = vlaneseq  ;;  %vm135_vm2 = vcmask 64512  }
   0x5   :  { %v418_v6 = vld [vmem:[%s570_s2] ss:$0 sm:$0xff]  ;;  %s388_s7 = sshll.u32 %s572_s4, 4  ;;  %s466_s8 = smov 128   ;;  %s389_s7 = int_to_ptr.hbm [resolvable:$true] %s388_s7 }
   0x6   :  { %408 = vmatpush.msra.mxu3 %v21_v4  ;;  %51 = vmatpush.msra.mxu0 %v21_v4  ;;  %v227_v24 = vshrl.u32 %v226_v23, 7  ;;  %v25_v56 = vld [vmem:[%s571_s3] sm:$0xff]  ;;  %s467_s9 = smov 8  }
   0x8   :  { %409 = vmatpush.msra.mxu3 %v20_v5  ;;  %52 = vmatpush.msra.mxu0 %v20_v5  ;;  %v234_v25 = vadd.s32 8, %v227_v24 }
   0x9   :  { %401 = vmatmul.msk.f32.vlgmr.msra.gmra.mxu3 %vm30_vm0, %v19_v2  ;;  %400 = vmatmul.msk.f32.vlgmr.msra.gmra.mxu0 %vm30_vm0, %v18_v3  ;;  %v26_v2 = vld [vmem:[%s571_s3 + $0x8] sm:$0xff]  ;;  %s465_s3 = smov [#allocation2]  }
   0xa   :  { %414 = vset.pattern.permute.xlu0 %v227_v24  ;;  %415 = vset.pattern.permute.xlu1 %v234_v25  ;;  %s386_s30 = sshll.u32 %s465_s3, 4  ;;  %s387_s30 = int_to_ptr.vmem [resolvable:$true] %s386_s30 }
  0x86   :  { %v54_v9 = vpop.f32.mrf.mxu0 }
  0x87   :  { %v55_v11 = vadd.f32 %v418_v6, %v54_v9 }
  0x89   :  { %v61_v12 = vsel %vm60_vm1, %v55_v11, -inf }
  0x8c   :  { %v57_v7 = vpop.f32.mrf.mxu3 }
  0x8d   :  { %v58_v8 = vadd.f32 %v418_v6, %v57_v7 }
  0x8f   :  { %v64_v10 = vsel %vm60_vm1, %v58_v8, -inf }
  0x90   :  { %65 = vmax.xlane.f32.xlu0 %v64_v10 }
  0x98   :  { %62 = vmax.xlane.f32.xlu0 %v61_v12 }
 0x103   :  { %v66_v13 = vpop.xlane.xlu0 %65 }
 0x104   :  { %v68_v14 = vsub.f32 %v58_v8, %v66_v13 }
 0x106   :  { %v71_v15 = vmul.f32 1.442695, %v68_v14 }
 0x108   :  { %419 = vpow2.f32 %v71_v15 }
 0x10b   :  { %v63_v16 = vpop.xlane.xlu0 %62 }
 0x10c   :  { %v67_v17 = vsub.f32 %v55_v11, %v63_v16 }
 0x10e   :  { %v420_v18 = vpop.eup %419  ;;  %v69_v19 = vmul.f32 1.442695, %v67_v17 }
 0x10f   :  { %v76_v20 = vsel %vm60_vm1, %v420_v18, 0.0 }
 0x110   :  { %421 = vpow2.f32 %v69_v19  ;;  %77 = vadd.xlane.f32.xlu1 %v76_v20 }
 0x116   :  { %v422_v21 = vpop.eup %421 }
 0x117   :  { %v73_v22 = vsel %vm60_vm1, %v422_v21, 0.0 }
 0x118   :  { %74 = vadd.xlane.f32.xlu1 %v73_v22 }
 0x183   :  { %v78_v26 = vpop.xlane.xlu1 %77 }
 0x184   :  { %423 = vrcp.f32 %v78_v26 }
 0x18a   :  { %v424_v27 = vpop.eup %423 }
 0x18b   :  { %v82_v28 = vmul.f32 %v424_v27, %v78_v26  ;;  %v75_v29 = vpop.xlane.xlu1 %74 }
 0x18c   :  { %425 = vrcp.f32 %v75_v29 }
 0x18d   :  { %v84_v30 = vsub.f32 2.0, %v82_v28 }
 0x18f   :  { %v86_v31 = vmul.f32 %v424_v27, %v84_v30 }
 0x191   :  { %v88_v32 = vmul.f32 %v420_v18, %v86_v31 }
 0x192   :  { %v426_v33 = vpop.eup %425 }
 0x193   :  { %v81_v34 = vmul.f32 %v426_v33, %v75_v29  ;;  %165 = vxpose.xlu2.b32.start.end [1/1] (short) (narrow) %v88_v32, 16  ;;  %v96_v36 = vsel %vm60_vm1, %v88_v32, 0.0 }
 0x194   :  { %v97_v39 = vrot.slane %v96_v36, 4 }
 0x195   :  { %v83_v35 = vsub.f32 2.0, %v81_v34 }
 0x196   :  { %v98_v42 = vadd.f32 %v97_v39, %v96_v36 }
 0x197   :  { %v85_v37 = vmul.f32 %v426_v33, %v83_v35 }
 0x198   :  { %v99_v45 = vrot.slane %v98_v42, 2 }
 0x199   :  { %v87_v38 = vmul.f32 %v422_v21, %v85_v37 }
 0x19a   :  { %v100_v49 = vadd.f32 %v99_v45, %v98_v42 }
 0x19b   :  { %v89_v40 = vsel %vm60_vm1, %v87_v38, 0.0 }
 0x19c   :  { %v90_v41 = vrot.slane %v89_v40, 4  ;;  %v101_v50 = vrot.slane %v100_v49, 1 }
 0x19e   :  { %v91_v43 = vadd.f32 %v90_v41, %v89_v40  ;;  %v102_v51 = vadd.f32 %v101_v50, %v100_v49 }
 0x1a0   :  { %v92_v44 = vrot.slane %v91_v43, 2 }
 0x1a2   :  { %v93_v46 = vadd.f32 %v92_v44, %v91_v43 }
 0x1a3   :  { %103 = vxpose.xlu2.b32.start.end [1/1] (short) (narrow) %v87_v38, 16 }
 0x1a4   :  { %v94_v47 = vrot.slane %v93_v46, 1 }
 0x1a6   :  { %v95_v48 = vadd.f32 %v94_v47, %v93_v46 }
 0x1a8   :  { %236 = vperm.xlu1 %415, %v95_v48   ;;  %230 = vperm.xlu0 %414, %v95_v48  }
 0x1b0   :  { %248 = vperm.xlu1 %415, %v102_v51   ;;  %417 = vset.pattern.permute.xlu0 %v234_v25 }
 0x205   :  { %416 = vset.pattern.permute.xlu2 %v227_v24 }
 0x214   :  { %242 = vperm.xlu2 %416, %v102_v51  }
 0x21a   :  { %v231_v57 = vpop.permute.xlu0 %230  ;;  %v237_v58 = vpop.permute.xlu1 %236 }
 0x21b   :  { %v250_v59 = vmul.f32 %v231_v57, %v25_v56  ;;  %v251_v5 = vmul.f32 %v237_v58, %v26_v2 }
 0x222   :  { %v249_v6 = vpop.permute.xlu1 %248 }
 0x223   :  { %v253_v11 = vmul.f32 %v249_v6, %v26_v2 }
 0x22c   :  { %v181_v52 = vpop.trf.xlu2 }
 0x22d   :  { %404 = vmatmul.msk.f32.vlgmr.msra.gmra.mxu2 %vm135_vm2, %v181_v52 }
 0x234   :  { %v182_v53 = vpop.trf.xlu2 }
 0x235   :  { %405 = vmatmul.msk.f32.gmra.mxu2 %vm135_vm2, %v182_v53 }
 0x23c   :  { %v119_v54 = vpop.trf.xlu2 }
 0x23d   :  { %402 = vmatmul.msk.f32.vlgmr.msra.gmra.mxu1 %vm135_vm2, %v119_v54 }
 0x244   :  { %v120_v55 = vpop.trf.xlu2 }
 0x245   :  { %403 = vmatmul.msk.f32.gmra.mxu1 %vm135_vm2, %v120_v55 }
 0x26e   :  { %v243_v60 = vpop.permute.xlu2 %242 }
 0x26f   :  { %v252_v0 = vmul.f32 %v243_v60, %v25_v56 }
 0x2b0   :  { %v220_v61 = vpop.f32.mrf.mxu2 }
 0x2b1   :  { %v528_v3 = vsub.f32 %v220_v61, %v252_v0 }
 0x2b3   :  { %v260_v9 = vmul.f32 %v528_v3, %v528_v3 }
 0x2b5   :  { %v268_v15 = vsel %vm30_vm0, %v260_v9, 0.0 }
 0x2b8   :  { %v223_v10 = vpop.f32.mrf.mxu2 }
 0x2b9   :  { %v537_v13 = vsub.f32 %v223_v10, %v253_v11 }
 0x2ba   :  { %v159_v62 = vpop.f32.mrf.mxu1 }
 0x2bb   :  { %v254_v63 = vsub.f32 %v159_v62, %v250_v59  ;;  %v261_v16 = vmul.f32 %v537_v13, %v537_v13 }
 0x2bd   :  { %v258_v1 = vmul.f32 %v254_v63, %v254_v63  ;;  %v271_v17 = vsel %vm30_vm0, %v261_v16, 0.0 }
 0x2bf   :  { %v262_v4 = vsel %vm30_vm0, %v258_v1, 0.0 }
 0x2c0   :  { %263 = vadd.xlane.f32.xlu1 %v262_v4 }
 0x2c2   :  { %v162_v7 = vpop.f32.mrf.mxu1 }
 0x2c3   :  { %v531_v8 = vsub.f32 %v162_v7, %v251_v5 }
 0x2c5   :  { %v259_v12 = vmul.f32 %v531_v8, %v531_v8 }
 0x2c7   :  { %v265_v14 = vsel %vm30_vm0, %v259_v12, 0.0 }
 0x2c8   :  { %266 = vadd.xlane.f32.xlu0 %v265_v14  ;;  %269 = vadd.xlane.f32.xlu1 %v268_v15 }
 0x2d0   :  { %272 = vadd.xlane.f32.xlu0 %v271_v17 }
 0x333   :  { %v264_v18 = vpop.xlane.xlu1 %263 }
 0x334   :  { %v274_v19 = vmax.f32 %v264_v18, 1e-24 }
 0x336   :  { %427 = vrsqrt.f32 %v274_v19  ;;  %vm284_vm4 = vweird.f32 %v274_v19 }
 0x33b   :  { %v270_v20 = vpop.xlane.xlu1 %269  ;;  %v267_v21 = vpop.xlane.xlu0 %266 }
 0x33c   :  { %v428_v22 = vpop.eup %427  ;;  %v276_v23 = vmax.f32 %v270_v20, 1e-24  ;;  %v275_v24 = vmax.f32 %v267_v21, 1e-24 }
 0x33d   :  { %v279_v25 = vmul.f32 %v428_v22, %v274_v19  ;;  %vm285_vm3 = vweird.f32 %v428_v22 }
 0x33e   :  { %429 = vrsqrt.f32 %v276_v23  ;;  %vm286_vm5 = vmor %vm284_vm4, %vm285_vm3  ;;  %vm304_vm8 = vweird.f32 %v276_v23  ;;  %vm294_vm10 = vweird.f32 %v275_v24 }
 0x33f   :  { %v280_v26 = vmul.f32 %v428_v22, %v279_v25  ;;  %431 = vrsqrt.f32 %v275_v24 }
 0x341   :  { %v281_v27 = vmul.f32 0.5, %v280_v26 }
 0x343   :  { %v282_v28 = vsub.f32 1.5, %v281_v27  ;;  %v273_v29 = vpop.xlane.xlu0 %272 }
 0x344   :  { %v430_v30 = vpop.eup %429  ;;  %v277_v31 = vmax.f32 %v273_v29, 1e-24 }
 0x345   :  { %v432_v32 = vpop.eup %431  ;;  %v299_v33 = vmul.f32 %v430_v30, %v276_v23  ;;  %v283_v34 = vmul.f32 %v428_v22, %v282_v28  ;;  %vm305_vm6 = vweird.f32 %v430_v30 }
 0x346   :  { %v289_v35 = vmul.f32 %v432_v32, %v275_v24  ;;  %433 = vrsqrt.f32 %v277_v31  ;;  %vm295_vm7 = vweird.f32 %v432_v32  ;;  %vm306_vm9 = vmor %vm304_vm8, %vm305_vm6  ;;  %vm314_vm13 = vweird.f32 %v277_v31 }
 0x347   :  { %v300_v36 = vmul.f32 %v430_v30, %v299_v33  ;;  %v287_v37 = vsel %vm286_vm5, %v428_v22, %v283_v34  ;;  %vm296_vm11 = vmor %vm294_vm10, %vm295_vm7 }
 0x348   :  { %v290_v38 = vmul.f32 %v432_v32, %v289_v35  ;;  %v544_v39 = vmul.f32 %v287_v37, %v254_v63 }
 0x349   :  { %v301_v40 = vmul.f32 0.5, %v300_v36 }
 0x34a   :  { %v291_v41 = vmul.f32 0.5, %v290_v38  ;;  %v322_v42 = vmul.f32 %v544_v39, %v544_v39 }
 0x34b   :  { %v302_v43 = vsub.f32 1.5, %v301_v40 }
 0x34c   :  { %v434_v44 = vpop.eup %433  ;;  %v292_v45 = vsub.f32 1.5, %v291_v41  ;;  %v326_v46 = vsel %vm30_vm0, %v322_v42, 0.0 }
 0x34d   :  { %v309_v47 = vmul.f32 %v434_v44, %v277_v31  ;;  %327 = vadd.xlane.f32.xlu1 %v326_v46  ;;  %v303_v48 = vmul.f32 %v430_v30, %v302_v43  ;;  %vm315_vm12 = vweird.f32 %v434_v44 }
 0x34e   :  { %v293_v49 = vmul.f32 %v432_v32, %v292_v45  ;;  %vm316_vm14 = vmor %vm314_vm13, %vm315_vm12 }
 0x34f   :  { %v310_v50 = vmul.f32 %v434_v44, %v309_v47  ;;  %v307_v51 = vsel %vm306_vm9, %v430_v30, %v303_v48 }
 0x350   :  { %v550_v52 = vmul.f32 %v307_v51, %v528_v3  ;;  %v297_v53 = vsel %vm296_vm11, %v432_v32, %v293_v49 }
 0x351   :  { %v311_v54 = vmul.f32 0.5, %v310_v50  ;;  %v319_v55 = vmul.f32 %v297_v53, %v531_v8 }
 0x352   :  { %v324_v56 = vmul.f32 %v550_v52, %v550_v52 }
 0x353   :  { %v312_v57 = vsub.f32 1.5, %v311_v54  ;;  %v323_v58 = vmul.f32 %v319_v55, %v319_v55 }
 0x354   :  { %v332_v59 = vsel %vm30_vm0, %v324_v56, 0.0 }
 0x355   :  { %333 = vadd.xlane.f32.xlu1 %v332_v59  ;;  %v329_v60 = vsel %vm30_vm0, %v323_v58, 0.0  ;;  %v313_v61 = vmul.f32 %v434_v44, %v312_v57 }
 0x356   :  { %330 = vadd.xlane.f32.xlu0 %v329_v60 }
 0x357   :  { %v317_v62 = vsel %vm316_vm14, %v434_v44, %v313_v61 }
 0x358   :  { %v321_v63 = vmul.f32 %v317_v62, %v537_v13 }
 0x35a   :  { %v325_v0 = vmul.f32 %v321_v63, %v321_v63 }
 0x35c   :  { %v335_v1 = vsel %vm30_vm0, %v325_v0, 0.0 }
 0x35e   :  { %336 = vadd.xlane.f32.xlu0 %v335_v1 }
 0x3c0   :  { %v328_v2 = vpop.xlane.xlu1 %327 }
 0x3c8   :  { %v334_v8 = vpop.xlane.xlu1 %333 }
 0x3c9   :  { %v331_v3 = vpop.xlane.xlu0 %330 }
 0x3ca   :  { %v338_v4 = vadd.f32 %v331_v3, %v328_v2 }
 0x3cc   :  { %v339_v5 = vrot.slane %v338_v4, 4 }
 0x3ce   :  { %v340_v6 = vadd.f32 %v339_v5, %v338_v4 }
 0x3d0   :  { %v341_v7 = vrot.slane %v340_v6, 2 }
 0x3d1   :  { %v337_v9 = vpop.xlane.xlu0 %336 }
 0x3d2   :  { %v342_v10 = vadd.f32 %v341_v7, %v340_v6  ;;  %v345_v11 = vadd.f32 %v337_v9, %v334_v8 }
 0x3d4   :  { %v343_v12 = vrot.slane %v342_v10, 1  ;;  %v346_v14 = vrot.slane %v345_v11, 4 }
 0x3d6   :  { %v344_v15 = vadd.f32 %v343_v12, %v342_v10  ;;  %v347_v16 = vadd.f32 %v346_v14, %v345_v11 }
 0x3d8   :  { %v352_v17 = vmax.f32 %v344_v15, 1e-24  ;;  %v348_v13 = vrot.slane %v347_v16, 2 }
 0x3da   :  { %435 = vrsqrt.f32 %v352_v17  ;;  %v349_v18 = vadd.f32 %v348_v13, %v347_v16  ;;  %vm360_vm1 = vweird.f32 %v352_v17 }
 0x3dc   :  { %v350_v19 = vrot.slane %v349_v18, 1 }
 0x3de   :  { %v351_v20 = vadd.f32 %v350_v19, %v349_v18 }
 0x3e0   :  { %v436_v21 = vpop.eup %435  ;;  %v353_v22 = vmax.f32 %v351_v20, 1e-24 }
 0x3e1   :  { %v355_v23 = vmul.f32 %v436_v21, %v352_v17  ;;  %vm361_vm15 = vweird.f32 %v436_v21 }
 0x3e2   :  { %437 = vrsqrt.f32 %v353_v22  ;;  %vm362_vm2 = vmor %vm360_vm1, %vm361_vm15  ;;  %vm370_vm4 = vweird.f32 %v353_v22 }
 0x3e3   :  { %v356_v24 = vmul.f32 %v436_v21, %v355_v23 }
 0x3e5   :  { %v357_v25 = vmul.f32 0.5, %v356_v24 }
 0x3e7   :  { %v358_v26 = vsub.f32 1.5, %v357_v25 }
 0x3e8   :  { %v438_v27 = vpop.eup %437 }
 0x3e9   :  { %v359_v28 = vmul.f32 %v436_v21, %v358_v26  ;;  %v365_v29 = vmul.f32 %v438_v27, %v353_v22  ;;  %vm371_vm3 = vweird.f32 %v438_v27 }
 0x3ea   :  { %vm372_vm5 = vmor %vm370_vm4, %vm371_vm3 }
 0x3eb   :  { %v363_v30 = vsel %vm362_vm2, %v436_v21, %v359_v28  ;;  %v366_v31 = vmul.f32 %v438_v27, %v365_v29 }
 0x3ec   :  { %v374_v32 = vmul.f32 %v363_v30, %v544_v39  ;;  %v375_v33 = vmul.f32 %v363_v30, %v319_v55 }
 0x3ed   :  { %v367_v34 = vmul.f32 0.5, %v366_v31 }
 0x3ee   :  { %378 = vst.msk [vmem:[#allocation2] sm:$0xff] %vm30_vm0, %v374_v32 }
 0x3ef   :  { %379 = vst.msk [vmem:[#allocation2 + $0x8] sm:$0xff] %vm30_vm0, %v375_v33  ;;  %v368_v35 = vsub.f32 1.5, %v367_v34 }
 0x3f1   :  { %v369_v36 = vmul.f32 %v438_v27, %v368_v35 }
 0x3f3   :  { %v373_v37 = vsel %vm372_vm5, %v438_v27, %v369_v36 }
 0x3f4   :  { %v376_v38 = vmul.f32 %v373_v37, %v550_v52  ;;  %v377_v39 = vmul.f32 %v373_v37, %v321_v63 }
 0x3f6   :  { %380 = vst.msk [vmem:[#allocation2 + $0x10] sm:$0xff] %vm30_vm0, %v376_v38 }
 0x3f7   :  { %381 = vst.msk [vmem:[#allocation2 + $0x18] sm:$0xff] %vm30_vm0, %v377_v39 }
 0x3f8   :  { %394 = dma.vmem_to_hbm [thread:$0]  %s387_s30, 512, %s389_s7, [#allocation3], %s466_s8, %s466_s8, %s467_s9  }
 0x3f9   :  { %463 = dma.done.wait [#allocation3], 512  }
 0x3fa   :  { %464 = vsyncadd [#allocation3], 4294966784 }
 0x3fb   :  { %399 = vsyncpa [#allocation3], 1 }

</bundles_post_ra>
